<compile_context>
chip_gen: v7x
topology: tpu7x:2x2x1
jax: 0.10.0
libtpu: 0.0.40
codegen_flags: <defaults>
</compile_context>

<pallas_src>
import functools
import math

import jax
import jax.numpy as jnp
from jax.experimental import pallas as pl
from jax.experimental.pallas import tpu as pltpu


def _norm_consts(max_l: int):
    """Same constants as the nn.Module buffer `norm_consts` (python floats)."""
    consts = []
    for l in range(max_l + 1):
        for m in range(l + 1):
            val = (2 * l + 1) / (4 * math.pi) * (
                math.factorial(l - m) / math.factorial(l + m)
            )
            consts.append(math.sqrt(val))
    return tuple(consts)


def _cdiv(a: int, b: int) -> int:
    return -(-a // b)


def _round_up(a: int, b: int) -> int:
    return _cdiv(a, b) * b


def _sbwh_kernel(in_ref, out_ref, *, max_l, max_n, cutoff, norm_consts, sub_rows):
    # in_ref:  (3, TR, 128) f32  -> rows of [r, costheta, phi]
    # out_ref: (num_out, TR, 128), num_out = (max_l+1)^2 * max_n
    tile_rows = out_ref.shape[1]
    n_strips = tile_rows // sub_rows
    sqrt2 = math.sqrt(2.0)
    norm_factor = math.sqrt(2.0 / cutoff)

    # Process the big DMA block in small sub-strips so vreg pressure stays low
    # (each temporary is one (8,128) vreg) while the per-step DMA stays large.
    @pl.loop(0, n_strips)
    def _(s):
        start = pl.multiple_of(s * sub_rows, sub_rows)
        rows = pl.ds(start, sub_rows)
        r = in_ref[0, rows, :]
        x = in_ref[1, rows, :]
        phi = in_ref[2, rows, :]

        # ---- Spherical Bessel: norm * sin(k*pi*r/cutoff) / (r + 1e-8), k=1..max_n
        inv_r = norm_factor / (r + 1e-8)
        theta = (math.pi / cutoff) * r
        s1 = jnp.sin(theta)
        c1 = jnp.cos(theta)
        sbf = []
        if max_n <= 8:
            # angle-addition recurrence: VPU only, no extra EUP; accurate at this depth
            s_k, c_k = s1, c1
            for k in range(max_n):
                sbf.append(s_k * inv_r)
                if k + 1 < max_n:
                    s_k, c_k = s_k * c1 + c_k * s1, c_k * c1 - s_k * s1
        else:
            # direct evaluation keeps the 2e-5 tolerance for deep n
            for k in range(max_n):
                sbf.append(jnp.sin((k + 1.0) * theta) * inv_r)

        # ---- Associated Legendre P_l^m(cos(theta))
        sintheta_sq = jnp.maximum(1.0 - x * x, 1e-10)
        sintheta = jnp.sqrt(sintheta_sq)
        x2 = x * x
        p = [jnp.ones_like(x)]                                   # P_0^0
        if max_l >= 1:
            p += [x, -sintheta]                                  # P_1^0, P_1^1
        if max_l >= 2:
            p += [0.5 * (3.0 * x2 - 1.0),                        # P_2^0
                  -3.0 * x * sintheta,                           # P_2^1
                  3.0 * sintheta_sq]                             # P_2^2
        if max_l >= 3:
            p += [0.5 * (5.0 * x2 - 3.0) * x,                    # P_3^0
                  -1.5 * (5.0 * x2 - 1.0) * sintheta,            # P_3^1
                  15.0 * x * sintheta_sq,                        # P_3^2
                  -15.0 * sintheta_sq * sintheta]                # P_3^3 (== -15*s2**1.5)

        # ---- cos(m*phi), sin(m*phi): 2 transcendentals + recurrences
        cos_m = [None] * (max_l + 1)
        sin_m = [None] * (max_l + 1)
        if max_l >= 1:
            cos_m[1] = jnp.cos(phi)
            sin_m[1] = jnp.sin(phi)
            for m in range(2, max_l + 1):
                cos_m[m] = cos_m[m - 1] * cos_m[1] - sin_m[m - 1] * sin_m[1]
                sin_m[m] = sin_m[m - 1] * cos_m[1] + cos_m[m - 1] * sin_m[1]

        # ---- fused outer product (shf_i * sbf_k), per-row lane-dense stores
        row = 0
        idx = 0                       # shared index into p / norm_consts ((l, m) order)
        for l in range(max_l + 1):
            sh = norm_consts[idx] * p[idx]
            for k in range(max_n):
                out_ref[row, rows, :] = (sh * sbf[k]).astype(out_ref.dtype)
                row += 1
            idx += 1
            for m in range(1, l + 1):
                base = (sqrt2 * norm_consts[idx]) * p[idx]
                sh_cos = base * cos_m[m]
                for k in range(max_n):
                    out_ref[row, rows, :] = (sh_cos * sbf[k]).astype(out_ref.dtype)
                    row += 1
                sh_sin = base * sin_m[m]
                for k in range(max_n):
                    out_ref[row, rows, :] = (sh_sin * sbf[k]).astype(out_ref.dtype)
                    row += 1
                idx += 1


@functools.partial(
    jax.jit,
    static_argnames=("max_n", "max_l", "cutoff", "tile_rows", "sub_rows",
                     "lanes", "out_dtype", "point_axis_last"))
def spherical_bessel_with_harmonics(r, costheta, phi=None, *,
                                    max_n: int, max_l: int, cutoff: float,
                                    tile_rows: int = 256, sub_rows: int = 8,
                                    lanes: int = 128,
                                    out_dtype=jnp.float32,
                                    point_axis_last: bool = False):
    """JAX/Pallas equivalent of SphericalBesselWithHarmonics(max_n, max_l, cutoff).

    r, costheta, phi: (N,) (or (N,1)) float arrays.
    Returns (N, (max_l+1)**2 * max_n) by default, matching the PyTorch module.
    With point_axis_last=True returns (num_out, N) (no wrapper transpose) so a
    downstream matmul can absorb the layout via dot_general dimension_numbers.
    """
    if max_l > 3:
        raise NotImplementedError("only max_l <= 3 supported")

    r = jnp.asarray(r, jnp.float32).reshape(-1)
    costheta = jnp.asarray(costheta, jnp.float32).reshape(-1)
    phi = (jnp.zeros_like(costheta) if phi is None
           else jnp.asarray(phi, jnp.float32).reshape(-1))

    n = r.shape[0]
    n_shf = (max_l + 1) ** 2
    num_out = n_shf * max_n

    # ---- choose the per-step block size (rows of 128 points)
    rows_needed = _cdiv(n, lanes)
    tr = max(sub_rows, min(tile_rows, _round_up(rows_needed, sub_rows)))
    # v7x has 2 TCs: when there is enough work, ensure the grid has >= 2 steps
    # so the "parallel" axis can be sharded across cores.
    if _round_up(rows_needed, tr) // tr < 2 and rows_needed >= 2 * sub_rows:
        tr = _round_up(_cdiv(rows_needed, 2), sub_rows)

    out_itemsize = jnp.dtype(out_dtype).itemsize

    def _block_bytes(t):
        return (num_out * out_itemsize + 3 * 4) * t * lanes

    # keep double-buffered blocks comfortably inside v7x's 64 MiB VMEM
    while tr > sub_rows and 2 * _block_bytes(tr) > (48 << 20):
        tr = max(sub_rows, _round_up(tr // 2, sub_rows))

    n_rows = _round_up(rows_needed, tr)
    n_pad = n_rows * lanes
    grid = (n_rows // tr,)

    # explicit scoped-VMEM budget: above v5e's 16 MiB default, below v7x's 64 MiB
    vmem_bytes = int(min(max(2 * _block_bytes(tr) + (2 << 20), 32 << 20), 64 << 20))

    # One stacked, padded input -> a single input DMA per grid step.
    # Tail padding uses a finite value (1.0); tail results are sliced off below.
    stacked = jnp.stack([r, costheta, phi], axis=0)
    stacked = jnp.pad(stacked, ((0, 0), (0, n_pad - n)),
                      constant_values=1.0).reshape(3, n_rows, lanes)

    kernel = functools.partial(
        _sbwh_kernel, max_l=max_l, max_n=max_n, cutoff=float(cutoff),
        norm_consts=_norm_consts(max_l), sub_rows=sub_rows)

    out = pl.pallas_call(
        kernel,
        out_shape=jax.ShapeDtypeStruct((num_out, n_rows, lanes), out_dtype),
        grid=grid,
        in_specs=[pl.BlockSpec((3, tr, lanes), lambda i: (0, i, 0))],
        out_specs=pl.BlockSpec((num_out, tr, lanes), lambda i: (0, i, 0)),
        compiler_params=pltpu.CompilerParams(
            dimension_semantics=("parallel",),
            vmem_limit_bytes=vmem_bytes),
    )(stacked)

    flat = out.reshape(num_out, n_pad)
    if point_axis_last:
        # (num_out, N): no transpose; downstream matmul absorbs the layout.
        return flat[:, :n]
    # PyTorch layout (N, num_out); the slice + transpose live inside this jit
    # so XLA can fuse them with the consumer.
    return flat[:, :n].T


def _reference(r, costheta, phi, max_n, max_l, cutoff):
    """Pure-JAX reference mirroring the torch module (for a sanity check)."""
    r = r.reshape(-1, 1).astype(jnp.float32)
    x = costheta.reshape(-1).astype(jnp.float32)
    phi = phi.reshape(-1).astype(jnp.float32)

    # SphericalBesselBasis
    j0_zeros = jnp.arange(1, max_n + 1, dtype=jnp.float32) * jnp.pi
    nfac = jnp.float32(math.sqrt(2.0 / cutoff))
    sbf = nfac * jnp.sin((j0_zeros / cutoff) * r) / (r + 1e-8)     # (N, max_n)

    # SphericalHarmonicsBasis
    s2 = jnp.maximum(1.0 - x * x, 1e-10)
    s = jnp.sqrt(s2)
    p = [jnp.ones_like(x), x, -s,
         0.5 * (3 * x * x - 1), -3 * x * s, 3 * s2,
         0.5 * (5 * x ** 3 - 3 * x), -1.5 * (5 * x * x - 1) * s,
         15 * x * s2, -15 * s2 ** 1.5]
    consts = _norm_consts(max_l)
    rows, idx = [], 0
    for l in range(max_l + 1):
        rows.append(consts[idx] * p[idx]); idx += 1
        for m in range(1, l + 1):
            pref = math.sqrt(2.0) * consts[idx]
            rows.append(pref * p[idx] * jnp.cos(m * phi))
            rows.append(pref * p[idx] * jnp.sin(m * phi))
            idx += 1
    shf = jnp.stack(rows, axis=1)                                  # (N, n_shf)

    # outer product, same ordering as the torch view/expand/reshape
    return (shf[:, :, None] * sbf[:, None, :]).reshape(shf.shape[0], -1)


if __name__ == "__main__":
    key = jax.random.PRNGKey(0)
    k1, k2, k3 = jax.random.split(key, 3)

    n = 200
    max_n = 3
    max_l = 3
    cutoff = 5.0

    r = jax.random.uniform(k1, (n,), jnp.float32, minval=0.5, maxval=cutoff)
    costheta = jax.random.uniform(k2, (n,), jnp.float32, minval=-1.0, maxval=1.0)
    phi = jax.random.uniform(k3, (n,), jnp.float32, minval=0.0,
                             maxval=2.0 * math.pi)

    out = spherical_bessel_with_harmonics(
        r, costheta, phi, max_n=max_n, max_l=max_l, cutoff=cutoff)
    out = jax.block_until_ready(out)

    ref = _reference(r, costheta, phi, max_n, max_l, cutoff)
    assert out.shape == (n, (max_l + 1) ** 2 * max_n)
    assert jnp.allclose(out, ref, atol=2e-5, rtol=2e-5)

    # phi=None path (defaults to zeros), as in the torch module
    out0 = jax.block_until_ready(spherical_bessel_with_harmonics(
        r, costheta, None, max_n=max_n, max_l=max_l, cutoff=cutoff))
    ref0 = _reference(r, costheta, jnp.zeros_like(costheta), max_n, max_l, cutoff)
    assert jnp.allclose(out0, ref0, atol=2e-5, rtol=2e-5)

    # transpose-free (num_out, N) layout for matmul consumers
    out_t = jax.block_until_ready(spherical_bessel_with_harmonics(
        r, costheta, phi, max_n=max_n, max_l=max_l, cutoff=cutoff,
        point_axis_last=True))
    assert jnp.allclose(out_t, ref.T, atol=2e-5, rtol=2e-5)

    print("KERNEL_OK")
</pallas_src>

<mosaic_0001>
module attributes {stable_mosaic.version = 11 : i64} {
  func.func @_sbwh_kernel(%arg0: i32, %arg1: memref<3x8x128xf32, #tpu.memory_space<vmem>>, %arg2: memref<48x8x128xf32, #tpu.memory_space<vmem>>) attributes {dimension_semantics = [#tpu.dimension_semantics<parallel>], iteration_bounds = array<i64: 1>, scalar_prefetch = 0 : i64, scratch_operands = 0 : i64, tpu.core_type = #tpu.core_type<tc>, window_params = [{transform_indices = @transform_0, window_bounds = array<i64: 3, 8, 128>}, {transform_indices = @transform_1, window_bounds = array<i64: 48, 8, 128>}]} {
    %c0_i32 = arith.constant 0 : i32
    %c1_i32 = arith.constant 1 : i32
    %0 = arith.muli %c0_i32, %c1_i32 : i32
    %c0_i32_0 = arith.constant 0 : i32
    %1 = arith.addi %c0_i32_0, %0 : i32
    %c8_i32 = arith.constant 8 : i32
    %2 = arith.muli %1, %c8_i32 : i32
    %3 = tpu.assume_multiple %2, 8 : i32
    %c0 = arith.constant 0 : index
    %4 = arith.index_cast %3 : i32 to index
    %c0_1 = arith.constant 0 : index
    %5 = vector.load %arg1[%c0, %4, %c0_1] : memref<3x8x128xf32, #tpu.memory_space<vmem>>, vector<1x8x128xf32>
    %6 = vector.shape_cast %5 : vector<1x8x128xf32> to vector<8x128xf32>
    %c1 = arith.constant 1 : index
    %7 = arith.index_cast %3 : i32 to index
    %c0_2 = arith.constant 0 : index
    %8 = vector.load %arg1[%c1, %7, %c0_2] : memref<3x8x128xf32, #tpu.memory_space<vmem>>, vector<1x8x128xf32>
    %9 = vector.shape_cast %8 : vector<1x8x128xf32> to vector<8x128xf32>
    %c2 = arith.constant 2 : index
    %10 = arith.index_cast %3 : i32 to index
    %c0_3 = arith.constant 0 : index
    %11 = vector.load %arg1[%c2, %10, %c0_3] : memref<3x8x128xf32, #tpu.memory_space<vmem>>, vector<1x8x128xf32>
    %12 = vector.shape_cast %11 : vector<1x8x128xf32> to vector<8x128xf32>
    %cst = arith.constant 9.99999993E-9 : f32
    %13 = vector.broadcast %cst : f32 to vector<8x128xf32>
    %14 = arith.addf %6, %13 : vector<8x128xf32>
    %cst_4 = arith.constant 0.632455527 : f32
    %15 = vector.broadcast %cst_4 : f32 to vector<8x128xf32>
    %16 = arith.divf %15, %14 : vector<8x128xf32>
    %cst_5 = arith.constant 0.628318548 : f32
    %17 = vector.broadcast %cst_5 : f32 to vector<8x128xf32>
    %18 = arith.mulf %17, %6 : vector<8x128xf32>
    %19 = math.sin %18 : vector<8x128xf32>
    %20 = math.cos %18 : vector<8x128xf32>
    %21 = arith.mulf %19, %16 : vector<8x128xf32>
    %22 = arith.mulf %19, %20 : vector<8x128xf32>
    %23 = arith.mulf %20, %19 : vector<8x128xf32>
    %24 = arith.addf %22, %23 : vector<8x128xf32>
    %25 = arith.mulf %20, %20 : vector<8x128xf32>
    %26 = arith.mulf %19, %19 : vector<8x128xf32>
    %27 = arith.subf %25, %26 : vector<8x128xf32>
    %28 = arith.mulf %24, %16 : vector<8x128xf32>
    %29 = arith.mulf %24, %20 : vector<8x128xf32>
    %30 = arith.mulf %27, %19 : vector<8x128xf32>
    %31 = arith.addf %29, %30 : vector<8x128xf32>
    %32 = arith.mulf %31, %16 : vector<8x128xf32>
    %33 = arith.mulf %9, %9 : vector<8x128xf32>
    %cst_6 = arith.constant 1.000000e+00 : f32
    %34 = vector.broadcast %cst_6 : f32 to vector<8x128xf32>
    %35 = arith.subf %34, %33 : vector<8x128xf32>
    %cst_7 = arith.constant 1.000000e-10 : f32
    %36 = vector.broadcast %cst_7 : f32 to vector<8x128xf32>
    %37 = arith.maximumf %35, %36 : vector<8x128xf32>
    %38 = math.sqrt %37 : vector<8x128xf32>
    %39 = arith.mulf %9, %9 : vector<8x128xf32>
    %cst_8 = arith.constant 1.000000e+00 : f32
    %40 = vector.broadcast %cst_8 : f32 to vector<8x128xf32>
    %cst_9 = arith.constant 0.000000e+00 : f32
    %41 = vector.broadcast %cst_9 : f32 to vector<8x128xf32>
    %42 = arith.subf %41, %38 : vector<8x128xf32>
    %cst_10 = arith.constant 3.000000e+00 : f32
    %43 = vector.broadcast %cst_10 : f32 to vector<8x128xf32>
    %44 = arith.mulf %43, %39 : vector<8x128xf32>
    %cst_11 = arith.constant 1.000000e+00 : f32
    %45 = vector.broadcast %cst_11 : f32 to vector<8x128xf32>
    %46 = arith.subf %44, %45 : vector<8x128xf32>
    %cst_12 = arith.constant 5.000000e-01 : f32
    %47 = vector.broadcast %cst_12 : f32 to vector<8x128xf32>
    %48 = arith.mulf %47, %46 : vector<8x128xf32>
    %cst_13 = arith.constant -3.000000e+00 : f32
    %49 = vector.broadcast %cst_13 : f32 to vector<8x128xf32>
    %50 = arith.mulf %49, %9 : vector<8x128xf32>
    %51 = arith.mulf %50, %38 : vector<8x128xf32>
    %cst_14 = arith.constant 3.000000e+00 : f32
    %52 = vector.broadcast %cst_14 : f32 to vector<8x128xf32>
    %53 = arith.mulf %52, %37 : vector<8x128xf32>
    %cst_15 = arith.constant 5.000000e+00 : f32
    %54 = vector.broadcast %cst_15 : f32 to vector<8x128xf32>
    %55 = arith.mulf %54, %39 : vector<8x128xf32>
    %cst_16 = arith.constant 3.000000e+00 : f32
    %56 = vector.broadcast %cst_16 : f32 to vector<8x128xf32>
    %57 = arith.subf %55, %56 : vector<8x128xf32>
    %cst_17 = arith.constant 5.000000e-01 : f32
    %58 = vector.broadcast %cst_17 : f32 to vector<8x128xf32>
    %59 = arith.mulf %58, %57 : vector<8x128xf32>
    %60 = arith.mulf %59, %9 : vector<8x128xf32>
    %cst_18 = arith.constant 5.000000e+00 : f32
    %61 = vector.broadcast %cst_18 : f32 to vector<8x128xf32>
    %62 = arith.mulf %61, %39 : vector<8x128xf32>
    %cst_19 = arith.constant 1.000000e+00 : f32
    %63 = vector.broadcast %cst_19 : f32 to vector<8x128xf32>
    %64 = arith.subf %62, %63 : vector<8x128xf32>
    %cst_20 = arith.constant -1.500000e+00 : f32
    %65 = vector.broadcast %cst_20 : f32 to vector<8x128xf32>
    %66 = arith.mulf %65, %64 : vector<8x128xf32>
    %67 = arith.mulf %66, %38 : vector<8x128xf32>
    %cst_21 = arith.constant 1.500000e+01 : f32
    %68 = vector.broadcast %cst_21 : f32 to vector<8x128xf32>
    %69 = arith.mulf %68, %9 : vector<8x128xf32>
    %70 = arith.mulf %69, %37 : vector<8x128xf32>
    %cst_22 = arith.constant -1.500000e+01 : f32
    %71 = vector.broadcast %cst_22 : f32 to vector<8x128xf32>
    %72 = arith.mulf %71, %37 : vector<8x128xf32>
    %73 = arith.mulf %72, %38 : vector<8x128xf32>
    %74 = math.cos %12 : vector<8x128xf32>
    %75 = math.sin %12 : vector<8x128xf32>
    %76 = arith.mulf %74, %74 : vector<8x128xf32>
    %77 = arith.mulf %75, %75 : vector<8x128xf32>
    %78 = arith.subf %76, %77 : vector<8x128xf32>
    %79 = arith.mulf %75, %74 : vector<8x128xf32>
    %80 = arith.mulf %74, %75 : vector<8x128xf32>
    %81 = arith.addf %79, %80 : vector<8x128xf32>
    %82 = arith.mulf %78, %74 : vector<8x128xf32>
    %83 = arith.mulf %81, %75 : vector<8x128xf32>
    %84 = arith.subf %82, %83 : vector<8x128xf32>
    %85 = arith.mulf %81, %74 : vector<8x128xf32>
    %86 = arith.mulf %78, %75 : vector<8x128xf32>
    %87 = arith.addf %85, %86 : vector<8x128xf32>
    %cst_23 = arith.constant 0.282094806 : f32
    %88 = vector.broadcast %cst_23 : f32 to vector<8x128xf32>
    %89 = arith.mulf %88, %40 : vector<8x128xf32>
    %90 = arith.mulf %89, %21 : vector<8x128xf32>
    %c0_24 = arith.constant 0 : index
    %91 = arith.index_cast %3 : i32 to index
    %c0_25 = arith.constant 0 : index
    %92 = vector.load %arg2[%c0_24, %91, %c0_25] : memref<48x8x128xf32, #tpu.memory_space<vmem>>, vector<1x8x128xf32>
    %93 = vector.shape_cast %92 : vector<1x8x128xf32> to vector<8x128xf32>
    %94 = vector.shape_cast %90 : vector<8x128xf32> to vector<1x8x128xf32>
    tpu.vector_store %arg2[%c0_24, %91, %c0_25], %94 {strides = array<i32>} : memref<48x8x128xf32, #tpu.memory_space<vmem>>, vector<1x8x128xf32>,
    %95 = arith.mulf %89, %28 : vector<8x128xf32>
    %c1_26 = arith.constant 1 : index
    %96 = arith.index_cast %3 : i32 to index
    %c0_27 = arith.constant 0 : index
    %97 = vector.load %arg2[%c1_26, %96, %c0_27] : memref<48x8x128xf32, #tpu.memory_space<vmem>>, vector<1x8x128xf32>
    %98 = vector.shape_cast %97 : vector<1x8x128xf32> to vector<8x128xf32>
    %99 = vector.shape_cast %95 : vector<8x128xf32> to vector<1x8x128xf32>
    tpu.vector_store %arg2[%c1_26, %96, %c0_27], %99 {strides = array<i32>} : memref<48x8x128xf32, #tpu.memory_space<vmem>>, vector<1x8x128xf32>,
    %100 = arith.mulf %89, %32 : vector<8x128xf32>
    %c2_28 = arith.constant 2 : index
    %101 = arith.index_cast %3 : i32 to index
    %c0_29 = arith.constant 0 : index
    %102 = vector.load %arg2[%c2_28, %101, %c0_29] : memref<48x8x128xf32, #tpu.memory_space<vmem>>, vector<1x8x128xf32>
    %103 = vector.shape_cast %102 : vector<1x8x128xf32> to vector<8x128xf32>
    %104 = vector.shape_cast %100 : vector<8x128xf32> to vector<1x8x128xf32>
    tpu.vector_store %arg2[%c2_28, %101, %c0_29], %104 {strides = array<i32>} : memref<48x8x128xf32, #tpu.memory_space<vmem>>, vector<1x8x128xf32>,
    %cst_30 = arith.constant 0.488602519 : f32
    %105 = vector.broadcast %cst_30 : f32 to vector<8x128xf32>
    %106 = arith.mulf %105, %9 : vector<8x128xf32>
    %107 = arith.mulf %106, %21 : vector<8x128xf32>
    %c3 = arith.constant 3 : index
    %108 = arith.index_cast %3 : i32 to index
    %c0_31 = arith.constant 0 : index
    %109 = vector.load %arg2[%c3, %108, %c0_31] : memref<48x8x128xf32, #tpu.memory_space<vmem>>, vector<1x8x128xf32>
    %110 = vector.shape_cast %109 : vector<1x8x128xf32> to vector<8x128xf32>
    %111 = vector.shape_cast %107 : vector<8x128xf32> to vector<1x8x128xf32>
    tpu.vector_store %arg2[%c3, %108, %c0_31], %111 {strides = array<i32>} : memref<48x8x128xf32, #tpu.memory_space<vmem>>, vector<1x8x128xf32>,
    %112 = arith.mulf %106, %28 : vector<8x128xf32>
    %c4 = arith.constant 4 : index
    %113 = arith.index_cast %3 : i32 to index
    %c0_32 = arith.constant 0 : index
    %114 = vector.load %arg2[%c4, %113, %c0_32] : memref<48x8x128xf32, #tpu.memory_space<vmem>>, vector<1x8x128xf32>
    %115 = vector.shape_cast %114 : vector<1x8x128xf32> to vector<8x128xf32>
    %116 = vector.shape_cast %112 : vector<8x128xf32> to vector<1x8x128xf32>
    tpu.vector_store %arg2[%c4, %113, %c0_32], %116 {strides = array<i32>} : memref<48x8x128xf32, #tpu.memory_space<vmem>>, vector<1x8x128xf32>,
    %117 = arith.mulf %106, %32 : vector<8x128xf32>
    %c5 = arith.constant 5 : index
    %118 = arith.index_cast %3 : i32 to index
    %c0_33 = arith.constant 0 : index
    %119 = vector.load %arg2[%c5, %118, %c0_33] : memref<48x8x128xf32, #tpu.memory_space<vmem>>, vector<1x8x128xf32>
    %120 = vector.shape_cast %119 : vector<1x8x128xf32> to vector<8x128xf32>
    %121 = vector.shape_cast %117 : vector<8x128xf32> to vector<1x8x128xf32>
    tpu.vector_store %arg2[%c5, %118, %c0_33], %121 {strides = array<i32>} : memref<48x8x128xf32, #tpu.memory_space<vmem>>, vector<1x8x128xf32>,
    %cst_34 = arith.constant 0.488602519 : f32
    %122 = vector.broadcast %cst_34 : f32 to vector<8x128xf32>
    %123 = arith.mulf %122, %42 : vector<8x128xf32>
    %124 = arith.mulf %123, %74 : vector<8x128xf32>
    %125 = arith.mulf %124, %21 : vector<8x128xf32>
    %c6 = arith.constant 6 : index
    %126 = arith.index_cast %3 : i32 to index
    %c0_35 = arith.constant 0 : index
    %127 = vector.load %arg2[%c6, %126, %c0_35] : memref<48x8x128xf32, #tpu.memory_space<vmem>>, vector<1x8x128xf32>
    %128 = vector.shape_cast %127 : vector<1x8x128xf32> to vector<8x128xf32>
    %129 = vector.shape_cast %125 : vector<8x128xf32> to vector<1x8x128xf32>
    tpu.vector_store %arg2[%c6, %126, %c0_35], %129 {strides = array<i32>} : memref<48x8x128xf32, #tpu.memory_space<vmem>>, vector<1x8x128xf32>,
    %130 = arith.mulf %124, %28 : vector<8x128xf32>
    %c7 = arith.constant 7 : index
    %131 = arith.index_cast %3 : i32 to index
    %c0_36 = arith.constant 0 : index
    %132 = vector.load %arg2[%c7, %131, %c0_36] : memref<48x8x128xf32, #tpu.memory_space<vmem>>, vector<1x8x128xf32>
    %133 = vector.shape_cast %132 : vector<1x8x128xf32> to vector<8x128xf32>
    %134 = vector.shape_cast %130 : vector<8x128xf32> to vector<1x8x128xf32>
    tpu.vector_store %arg2[%c7, %131, %c0_36], %134 {strides = array<i32>} : memref<48x8x128xf32, #tpu.memory_space<vmem>>, vector<1x8x128xf32>,
    %135 = arith.mulf %124, %32 : vector<8x128xf32>
    %c8 = arith.constant 8 : index
    %136 = arith.index_cast %3 : i32 to index
    %c0_37 = arith.constant 0 : index
    %137 = vector.load %arg2[%c8, %136, %c0_37] : memref<48x8x128xf32, #tpu.memory_space<vmem>>, vector<1x8x128xf32>
    %138 = vector.shape_cast %137 : vector<1x8x128xf32> to vector<8x128xf32>
    %139 = vector.shape_cast %135 : vector<8x128xf32> to vector<1x8x128xf32>
    tpu.vector_store %arg2[%c8, %136, %c0_37], %139 {strides = array<i32>} : memref<48x8x128xf32, #tpu.memory_space<vmem>>, vector<1x8x128xf32>,
    %140 = arith.mulf %123, %75 : vector<8x128xf32>
    %141 = arith.mulf %140, %21 : vector<8x128xf32>
    %c9 = arith.constant 9 : index
    %142 = arith.index_cast %3 : i32 to index
    %c0_38 = arith.constant 0 : index
    %143 = vector.load %arg2[%c9, %142, %c0_38] : memref<48x8x128xf32, #tpu.memory_space<vmem>>, vector<1x8x128xf32>
    %144 = vector.shape_cast %143 : vector<1x8x128xf32> to vector<8x128xf32>
    %145 = vector.shape_cast %141 : vector<8x128xf32> to vector<1x8x128xf32>
    tpu.vector_store %arg2[%c9, %142, %c0_38], %145 {strides = array<i32>} : memref<48x8x128xf32, #tpu.memory_space<vmem>>, vector<1x8x128xf32>,
    %146 = arith.mulf %140, %28 : vector<8x128xf32>
    %c10 = arith.constant 10 : index
    %147 = arith.index_cast %3 : i32 to index
    %c0_39 = arith.constant 0 : index
    %148 = vector.load %arg2[%c10, %147, %c0_39] : memref<48x8x128xf32, #tpu.memory_space<vmem>>, vector<1x8x128xf32>
    %149 = vector.shape_cast %148 : vector<1x8x128xf32> to vector<8x128xf32>
    %150 = vector.shape_cast %146 : vector<8x128xf32> to vector<1x8x128xf32>
    tpu.vector_store %arg2[%c10, %147, %c0_39], %150 {strides = array<i32>} : memref<48x8x128xf32, #tpu.memory_space<vmem>>, vector<1x8x128xf32>,
    %151 = arith.mulf %140, %32 : vector<8x128xf32>
    %c11 = arith.constant 11 : index
    %152 = arith.index_cast %3 : i32 to index
    %c0_40 = arith.constant 0 : index
    %153 = vector.load %arg2[%c11, %152, %c0_40] : memref<48x8x128xf32, #tpu.memory_space<vmem>>, vector<1x8x128xf32>
    %154 = vector.shape_cast %153 : vector<1x8x128xf32> to vector<8x128xf32>
    %155 = vector.shape_cast %151 : vector<8x128xf32> to vector<1x8x128xf32>
    tpu.vector_store %arg2[%c11, %152, %c0_40], %155 {strides = array<i32>} : memref<48x8x128xf32, #tpu.memory_space<vmem>>, vector<1x8x128xf32>,
    %cst_41 = arith.constant 0.63078314 : f32
    %156 = vector.broadcast %cst_41 : f32 to vector<8x128xf32>
    %157 = arith.mulf %156, %48 : vector<8x128xf32>
    %158 = arith.mulf %157, %21 : vector<8x128xf32>
    %c12 = arith.constant 12 : index
    %159 = arith.index_cast %3 : i32 to index
    %c0_42 = arith.constant 0 : index
    %160 = vector.load %arg2[%c12, %159, %c0_42] : memref<48x8x128xf32, #tpu.memory_space<vmem>>, vector<1x8x128xf32>
    %161 = vector.shape_cast %160 : vector<1x8x128xf32> to vector<8x128xf32>
    %162 = vector.shape_cast %158 : vector<8x128xf32> to vector<1x8x128xf32>
    tpu.vector_store %arg2[%c12, %159, %c0_42], %162 {strides = array<i32>} : memref<48x8x128xf32, #tpu.memory_space<vmem>>, vector<1x8x128xf32>,
    %163 = arith.mulf %157, %28 : vector<8x128xf32>
    %c13 = arith.constant 13 : index
    %164 = arith.index_cast %3 : i32 to index
    %c0_43 = arith.constant 0 : index
    %165 = vector.load %arg2[%c13, %164, %c0_43] : memref<48x8x128xf32, #tpu.memory_space<vmem>>, vector<1x8x128xf32>
    %166 = vector.shape_cast %165 : vector<1x8x128xf32> to vector<8x128xf32>
    %167 = vector.shape_cast %163 : vector<8x128xf32> to vector<1x8x128xf32>
    tpu.vector_store %arg2[%c13, %164, %c0_43], %167 {strides = array<i32>} : memref<48x8x128xf32, #tpu.memory_space<vmem>>, vector<1x8x128xf32>,
    %168 = arith.mulf %157, %32 : vector<8x128xf32>
    %c14 = arith.constant 14 : index
    %169 = arith.index_cast %3 : i32 to index
    %c0_44 = arith.constant 0 : index
    %170 = vector.load %arg2[%c14, %169, %c0_44] : memref<48x8x128xf32, #tpu.memory_space<vmem>>, vector<1x8x128xf32>
    %171 = vector.shape_cast %170 : vector<1x8x128xf32> to vector<8x128xf32>
    %172 = vector.shape_cast %168 : vector<8x128xf32> to vector<1x8x128xf32>
    tpu.vector_store %arg2[%c14, %169, %c0_44], %172 {strides = array<i32>} : memref<48x8x128xf32, #tpu.memory_space<vmem>>, vector<1x8x128xf32>,
    %cst_45 = arith.constant 0.3641828 : f32
    %173 = vector.broadcast %cst_45 : f32 to vector<8x128xf32>
    %174 = arith.mulf %173, %51 : vector<8x128xf32>
    %175 = arith.mulf %174, %74 : vector<8x128xf32>
    %176 = arith.mulf %175, %21 : vector<8x128xf32>
    %c15 = arith.constant 15 : index
    %177 = arith.index_cast %3 : i32 to index
    %c0_46 = arith.constant 0 : index
    %178 = vector.load %arg2[%c15, %177, %c0_46] : memref<48x8x128xf32, #tpu.memory_space<vmem>>, vector<1x8x128xf32>
    %179 = vector.shape_cast %178 : vector<1x8x128xf32> to vector<8x128xf32>
    %180 = vector.shape_cast %176 : vector<8x128xf32> to vector<1x8x128xf32>
    tpu.vector_store %arg2[%c15, %177, %c0_46], %180 {strides = array<i32>} : memref<48x8x128xf32, #tpu.memory_space<vmem>>, vector<1x8x128xf32>,
    %181 = arith.mulf %175, %28 : vector<8x128xf32>
    %c16 = arith.constant 16 : index
    %182 = arith.index_cast %3 : i32 to index
    %c0_47 = arith.constant 0 : index
    %183 = vector.load %arg2[%c16, %182, %c0_47] : memref<48x8x128xf32, #tpu.memory_space<vmem>>, vector<1x8x128xf32>
    %184 = vector.shape_cast %183 : vector<1x8x128xf32> to vector<8x128xf32>
    %185 = vector.shape_cast %181 : vector<8x128xf32> to vector<1x8x128xf32>
    tpu.vector_store %arg2[%c16, %182, %c0_47], %185 {strides = array<i32>} : memref<48x8x128xf32, #tpu.memory_space<vmem>>, vector<1x8x128xf32>,
    %186 = arith.mulf %175, %32 : vector<8x128xf32>
    %c17 = arith.constant 17 : index
    %187 = arith.index_cast %3 : i32 to index
    %c0_48 = arith.constant 0 : index
    %188 = vector.load %arg2[%c17, %187, %c0_48] : memref<48x8x128xf32, #tpu.memory_space<vmem>>, vector<1x8x128xf32>
    %189 = vector.shape_cast %188 : vector<1x8x128xf32> to vector<8x128xf32>
    %190 = vector.shape_cast %186 : vector<8x128xf32> to vector<1x8x128xf32>
    tpu.vector_store %arg2[%c17, %187, %c0_48], %190 {strides = array<i32>} : memref<48x8x128xf32, #tpu.memory_space<vmem>>, vector<1x8x128xf32>,
    %191 = arith.mulf %174, %75 : vector<8x128xf32>
    %192 = arith.mulf %191, %21 : vector<8x128xf32>
    %c18 = arith.constant 18 : index
    %193 = arith.index_cast %3 : i32 to index
    %c0_49 = arith.constant 0 : index
    %194 = vector.load %arg2[%c18, %193, %c0_49] : memref<48x8x128xf32, #tpu.memory_space<vmem>>, vector<1x8x128xf32>
    %195 = vector.shape_cast %194 : vector<1x8x128xf32> to vector<8x128xf32>
    %196 = vector.shape_cast %192 : vector<8x128xf32> to vector<1x8x128xf32>
    tpu.vector_store %arg2[%c18, %193, %c0_49], %196 {strides = array<i32>} : memref<48x8x128xf32, #tpu.memory_space<vmem>>, vector<1x8x128xf32>,
    %197 = arith.mulf %191, %28 : vector<8x128xf32>
    %c19 = arith.constant 19 : index
    %198 = arith.index_cast %3 : i32 to index
    %c0_50 = arith.constant 0 : index
    %199 = vector.load %arg2[%c19, %198, %c0_50] : memref<48x8x128xf32, #tpu.memory_space<vmem>>, vector<1x8x128xf32>
    %200 = vector.shape_cast %199 : vector<1x8x128xf32> to vector<8x128xf32>
    %201 = vector.shape_cast %197 : vector<8x128xf32> to vector<1x8x128xf32>
    tpu.vector_store %arg2[%c19, %198, %c0_50], %201 {strides = array<i32>} : memref<48x8x128xf32, #tpu.memory_space<vmem>>, vector<1x8x128xf32>,
    %202 = arith.mulf %191, %32 : vector<8x128xf32>
    %c20 = arith.constant 20 : index
    %203 = arith.index_cast %3 : i32 to index
    %c0_51 = arith.constant 0 : index
    %204 = vector.load %arg2[%c20, %203, %c0_51] : memref<48x8x128xf32, #tpu.memory_space<vmem>>, vector<1x8x128xf32>
    %205 = vector.shape_cast %204 : vector<1x8x128xf32> to vector<8x128xf32>
    %206 = vector.shape_cast %202 : vector<8x128xf32> to vector<1x8x128xf32>
    tpu.vector_store %arg2[%c20, %203, %c0_51], %206 {strides = array<i32>} : memref<48x8x128xf32, #tpu.memory_space<vmem>>, vector<1x8x128xf32>,
    %cst_52 = arith.constant 0.1820914 : f32
    %207 = vector.broadcast %cst_52 : f32 to vector<8x128xf32>
    %208 = arith.mulf %207, %53 : vector<8x128xf32>
    %209 = arith.mulf %208, %78 : vector<8x128xf32>
    %210 = arith.mulf %209, %21 : vector<8x128xf32>
    %c21 = arith.constant 21 : index
    %211 = arith.index_cast %3 : i32 to index
    %c0_53 = arith.constant 0 : index
    %212 = vector.load %arg2[%c21, %211, %c0_53] : memref<48x8x128xf32, #tpu.memory_space<vmem>>, vector<1x8x128xf32>
    %213 = vector.shape_cast %212 : vector<1x8x128xf32> to vector<8x128xf32>
    %214 = vector.shape_cast %210 : vector<8x128xf32> to vector<1x8x128xf32>
    tpu.vector_store %arg2[%c21, %211, %c0_53], %214 {strides = array<i32>} : memref<48x8x128xf32, #tpu.memory_space<vmem>>, vector<1x8x128xf32>,
    %215 = arith.mulf %209, %28 : vector<8x128xf32>
    %c22 = arith.constant 22 : index
    %216 = arith.index_cast %3 : i32 to index
    %c0_54 = arith.constant 0 : index
    %217 = vector.load %arg2[%c22, %216, %c0_54] : memref<48x8x128xf32, #tpu.memory_space<vmem>>, vector<1x8x128xf32>
    %218 = vector.shape_cast %217 : vector<1x8x128xf32> to vector<8x128xf32>
    %219 = vector.shape_cast %215 : vector<8x128xf32> to vector<1x8x128xf32>
    tpu.vector_store %arg2[%c22, %216, %c0_54], %219 {strides = array<i32>} : memref<48x8x128xf32, #tpu.memory_space<vmem>>, vector<1x8x128xf32>,
    %220 = arith.mulf %209, %32 : vector<8x128xf32>
    %c23 = arith.constant 23 : index
    %221 = arith.index_cast %3 : i32 to index
    %c0_55 = arith.constant 0 : index
    %222 = vector.load %arg2[%c23, %221, %c0_55] : memref<48x8x128xf32, #tpu.memory_space<vmem>>, vector<1x8x128xf32>
    %223 = vector.shape_cast %222 : vector<1x8x128xf32> to vector<8x128xf32>
    %224 = vector.shape_cast %220 : vector<8x128xf32> to vector<1x8x128xf32>
    tpu.vector_store %arg2[%c23, %221, %c0_55], %224 {strides = array<i32>} : memref<48x8x128xf32, #tpu.memory_space<vmem>>, vector<1x8x128xf32>,
    %225 = arith.mulf %208, %81 : vector<8x128xf32>
    %226 = arith.mulf %225, %21 : vector<8x128xf32>
    %c24 = arith.constant 24 : index
    %227 = arith.index_cast %3 : i32 to index
    %c0_56 = arith.constant 0 : index
    %228 = vector.load %arg2[%c24, %227, %c0_56] : memref<48x8x128xf32, #tpu.memory_space<vmem>>, vector<1x8x128xf32>
    %229 = vector.shape_cast %228 : vector<1x8x128xf32> to vector<8x128xf32>
    %230 = vector.shape_cast %226 : vector<8x128xf32> to vector<1x8x128xf32>
    tpu.vector_store %arg2[%c24, %227, %c0_56], %230 {strides = array<i32>} : memref<48x8x128xf32, #tpu.memory_space<vmem>>, vector<1x8x128xf32>,
    %231 = arith.mulf %225, %28 : vector<8x128xf32>
    %c25 = arith.constant 25 : index
    %232 = arith.index_cast %3 : i32 to index
    %c0_57 = arith.constant 0 : index
    %233 = vector.load %arg2[%c25, %232, %c0_57] : memref<48x8x128xf32, #tpu.memory_space<vmem>>, vector<1x8x128xf32>
    %234 = vector.shape_cast %233 : vector<1x8x128xf32> to vector<8x128xf32>
    %235 = vector.shape_cast %231 : vector<8x128xf32> to vector<1x8x128xf32>
    tpu.vector_store %arg2[%c25, %232, %c0_57], %235 {strides = array<i32>} : memref<48x8x128xf32, #tpu.memory_space<vmem>>, vector<1x8x128xf32>,
    %236 = arith.mulf %225, %32 : vector<8x128xf32>
    %c26 = arith.constant 26 : index
    %237 = arith.index_cast %3 : i32 to index
    %c0_58 = arith.constant 0 : index
    %238 = vector.load %arg2[%c26, %237, %c0_58] : memref<48x8x128xf32, #tpu.memory_space<vmem>>, vector<1x8x128xf32>
    %239 = vector.shape_cast %238 : vector<1x8x128xf32> to vector<8x128xf32>
    %240 = vector.shape_cast %236 : vector<8x128xf32> to vector<1x8x128xf32>
    tpu.vector_store %arg2[%c26, %237, %c0_58], %240 {strides = array<i32>} : memref<48x8x128xf32, #tpu.memory_space<vmem>>, vector<1x8x128xf32>,
    %cst_59 = arith.constant 0.746352672 : f32
    %241 = vector.broadcast %cst_59 : f32 to vector<8x128xf32>
    %242 = arith.mulf %241, %60 : vector<8x128xf32>
    %243 = arith.mulf %242, %21 : vector<8x128xf32>
    %c27 = arith.constant 27 : index
    %244 = arith.index_cast %3 : i32 to index
    %c0_60 = arith.constant 0 : index
    %245 = vector.load %arg2[%c27, %244, %c0_60] : memref<48x8x128xf32, #tpu.memory_space<vmem>>, vector<1x8x128xf32>
    %246 = vector.shape_cast %245 : vector<1x8x128xf32> to vector<8x128xf32>
    %247 = vector.shape_cast %243 : vector<8x128xf32> to vector<1x8x128xf32>
    tpu.vector_store %arg2[%c27, %244, %c0_60], %247 {strides = array<i32>} : memref<48x8x128xf32, #tpu.memory_space<vmem>>, vector<1x8x128xf32>,
    %248 = arith.mulf %242, %28 : vector<8x128xf32>
    %c28 = arith.constant 28 : index
    %249 = arith.index_cast %3 : i32 to index
    %c0_61 = arith.constant 0 : index
    %250 = vector.load %arg2[%c28, %249, %c0_61] : memref<48x8x128xf32, #tpu.memory_space<vmem>>, vector<1x8x128xf32>
    %251 = vector.shape_cast %250 : vector<1x8x128xf32> to vector<8x128xf32>
    %252 = vector.shape_cast %248 : vector<8x128xf32> to vector<1x8x128xf32>
    tpu.vector_store %arg2[%c28, %249, %c0_61], %252 {strides = array<i32>} : memref<48x8x128xf32, #tpu.memory_space<vmem>>, vector<1x8x128xf32>,
    %253 = arith.mulf %242, %32 : vector<8x128xf32>
    %c29 = arith.constant 29 : index
    %254 = arith.index_cast %3 : i32 to index
    %c0_62 = arith.constant 0 : index
    %255 = vector.load %arg2[%c29, %254, %c0_62] : memref<48x8x128xf32, #tpu.memory_space<vmem>>, vector<1x8x128xf32>
    %256 = vector.shape_cast %255 : vector<1x8x128xf32> to vector<8x128xf32>
    %257 = vector.shape_cast %253 : vector<8x128xf32> to vector<1x8x128xf32>
    tpu.vector_store %arg2[%c29, %254, %c0_62], %257 {strides = array<i32>} : memref<48x8x128xf32, #tpu.memory_space<vmem>>, vector<1x8x128xf32>,
    %cst_63 = arith.constant 0.304697186 : f32
    %258 = vector.broadcast %cst_63 : f32 to vector<8x128xf32>
    %259 = arith.mulf %258, %67 : vector<8x128xf32>
    %260 = arith.mulf %259, %74 : vector<8x128xf32>
    %261 = arith.mulf %260, %21 : vector<8x128xf32>
    %c30 = arith.constant 30 : index
    %262 = arith.index_cast %3 : i32 to index
    %c0_64 = arith.constant 0 : index
    %263 = vector.load %arg2[%c30, %262, %c0_64] : memref<48x8x128xf32, #tpu.memory_space<vmem>>, vector<1x8x128xf32>
    %264 = vector.shape_cast %263 : vector<1x8x128xf32> to vector<8x128xf32>
    %265 = vector.shape_cast %261 : vector<8x128xf32> to vector<1x8x128xf32>
    tpu.vector_store %arg2[%c30, %262, %c0_64], %265 {strides = array<i32>} : memref<48x8x128xf32, #tpu.memory_space<vmem>>, vector<1x8x128xf32>,
    %266 = arith.mulf %260, %28 : vector<8x128xf32>
    %c31 = arith.constant 31 : index
    %267 = arith.index_cast %3 : i32 to index
    %c0_65 = arith.constant 0 : index
    %268 = vector.load %arg2[%c31, %267, %c0_65] : memref<48x8x128xf32, #tpu.memory_space<vmem>>, vector<1x8x128xf32>
    %269 = vector.shape_cast %268 : vector<1x8x128xf32> to vector<8x128xf32>
    %270 = vector.shape_cast %266 : vector<8x128xf32> to vector<1x8x128xf32>
    tpu.vector_store %arg2[%c31, %267, %c0_65], %270 {strides = array<i32>} : memref<48x8x128xf32, #tpu.memory_space<vmem>>, vector<1x8x128xf32>,
    %271 = arith.mulf %260, %32 : vector<8x128xf32>
    %c32 = arith.constant 32 : index
    %272 = arith.index_cast %3 : i32 to index
    %c0_66 = arith.constant 0 : index
    %273 = vector.load %arg2[%c32, %272, %c0_66] : memref<48x8x128xf32, #tpu.memory_space<vmem>>, vector<1x8x128xf32>
    %274 = vector.shape_cast %273 : vector<1x8x128xf32> to vector<8x128xf32>
    %275 = vector.shape_cast %271 : vector<8x128xf32> to vector<1x8x128xf32>
    tpu.vector_store %arg2[%c32, %272, %c0_66], %275 {strides = array<i32>} : memref<48x8x128xf32, #tpu.memory_space<vmem>>, vector<1x8x128xf32>,
    %276 = arith.mulf %259, %75 : vector<8x128xf32>
    %277 = arith.mulf %276, %21 : vector<8x128xf32>
    %c33 = arith.constant 33 : index
    %278 = arith.index_cast %3 : i32 to index
    %c0_67 = arith.constant 0 : index
    %279 = vector.load %arg2[%c33, %278, %c0_67] : memref<48x8x128xf32, #tpu.memory_space<vmem>>, vector<1x8x128xf32>
    %280 = vector.shape_cast %279 : vector<1x8x128xf32> to vector<8x128xf32>
    %281 = vector.shape_cast %277 : vector<8x128xf32> to vector<1x8x128xf32>
    tpu.vector_store %arg2[%c33, %278, %c0_67], %281 {strides = array<i32>} : memref<48x8x128xf32, #tpu.memory_space<vmem>>, vector<1x8x128xf32>,
    %282 = arith.mulf %276, %28 : vector<8x128xf32>
    %c34 = arith.constant 34 : index
    %283 = arith.index_cast %3 : i32 to index
    %c0_68 = arith.constant 0 : index
    %284 = vector.load %arg2[%c34, %283, %c0_68] : memref<48x8x128xf32, #tpu.memory_space<vmem>>, vector<1x8x128xf32>
    %285 = vector.shape_cast %284 : vector<1x8x128xf32> to vector<8x128xf32>
    %286 = vector.shape_cast %282 : vector<8x128xf32> to vector<1x8x128xf32>
    tpu.vector_store %arg2[%c34, %283, %c0_68], %286 {strides = array<i32>} : memref<48x8x128xf32, #tpu.memory_space<vmem>>, vector<1x8x128xf32>,
    %287 = arith.mulf %276, %32 : vector<8x128xf32>
    %c35 = arith.constant 35 : index
    %288 = arith.index_cast %3 : i32 to index
    %c0_69 = arith.constant 0 : index
    %289 = vector.load %arg2[%c35, %288, %c0_69] : memref<48x8x128xf32, #tpu.memory_space<vmem>>, vector<1x8x128xf32>
    %290 = vector.shape_cast %289 : vector<1x8x128xf32> to vector<8x128xf32>
    %291 = vector.shape_cast %287 : vector<8x128xf32> to vector<1x8x128xf32>
    tpu.vector_store %arg2[%c35, %288, %c0_69], %291 {strides = array<i32>} : memref<48x8x128xf32, #tpu.memory_space<vmem>>, vector<1x8x128xf32>,
    %cst_70 = arith.constant 0.0963537171 : f32
    %292 = vector.broadcast %cst_70 : f32 to vector<8x128xf32>
    %293 = arith.mulf %292, %70 : vector<8x128xf32>
    %294 = arith.mulf %293, %78 : vector<8x128xf32>
    %295 = arith.mulf %294, %21 : vector<8x128xf32>
    %c36 = arith.constant 36 : index
    %296 = arith.index_cast %3 : i32 to index
    %c0_71 = arith.constant 0 : index
    %297 = vector.load %arg2[%c36, %296, %c0_71] : memref<48x8x128xf32, #tpu.memory_space<vmem>>, vector<1x8x128xf32>
    %298 = vector.shape_cast %297 : vector<1x8x128xf32> to vector<8x128xf32>
    %299 = vector.shape_cast %295 : vector<8x128xf32> to vector<1x8x128xf32>
    tpu.vector_store %arg2[%c36, %296, %c0_71], %299 {strides = array<i32>} : memref<48x8x128xf32, #tpu.memory_space<vmem>>, vector<1x8x128xf32>,
    %300 = arith.mulf %294, %28 : vector<8x128xf32>
    %c37 = arith.constant 37 : index
    %301 = arith.index_cast %3 : i32 to index
    %c0_72 = arith.constant 0 : index
    %302 = vector.load %arg2[%c37, %301, %c0_72] : memref<48x8x128xf32, #tpu.memory_space<vmem>>, vector<1x8x128xf32>
    %303 = vector.shape_cast %302 : vector<1x8x128xf32> to vector<8x128xf32>
    %304 = vector.shape_cast %300 : vector<8x128xf32> to vector<1x8x128xf32>
    tpu.vector_store %arg2[%c37, %301, %c0_72], %304 {strides = array<i32>} : memref<48x8x128xf32, #tpu.memory_space<vmem>>, vector<1x8x128xf32>,
    %305 = arith.mulf %294, %32 : vector<8x128xf32>
    %c38 = arith.constant 38 : index
    %306 = arith.index_cast %3 : i32 to index
    %c0_73 = arith.constant 0 : index
    %307 = vector.load %arg2[%c38, %306, %c0_73] : memref<48x8x128xf32, #tpu.memory_space<vmem>>, vector<1x8x128xf32>
    %308 = vector.shape_cast %307 : vector<1x8x128xf32> to vector<8x128xf32>
    %309 = vector.shape_cast %305 : vector<8x128xf32> to vector<1x8x128xf32>
    tpu.vector_store %arg2[%c38, %306, %c0_73], %309 {strides = array<i32>} : memref<48x8x128xf32, #tpu.memory_space<vmem>>, vector<1x8x128xf32>,
    %310 = arith.mulf %293, %81 : vector<8x128xf32>
    %311 = arith.mulf %310, %21 : vector<8x128xf32>
    %c39 = arith.constant 39 : index
    %312 = arith.index_cast %3 : i32 to index
    %c0_74 = arith.constant 0 : index
    %313 = vector.load %arg2[%c39, %312, %c0_74] : memref<48x8x128xf32, #tpu.memory_space<vmem>>, vector<1x8x128xf32>
    %314 = vector.shape_cast %313 : vector<1x8x128xf32> to vector<8x128xf32>
    %315 = vector.shape_cast %311 : vector<8x128xf32> to vector<1x8x128xf32>
    tpu.vector_store %arg2[%c39, %312, %c0_74], %315 {strides = array<i32>} : memref<48x8x128xf32, #tpu.memory_space<vmem>>, vector<1x8x128xf32>,
    %316 = arith.mulf %310, %28 : vector<8x128xf32>
    %c40 = arith.constant 40 : index
    %317 = arith.index_cast %3 : i32 to index
    %c0_75 = arith.constant 0 : index
    %318 = vector.load %arg2[%c40, %317, %c0_75] : memref<48x8x128xf32, #tpu.memory_space<vmem>>, vector<1x8x128xf32>
    %319 = vector.shape_cast %318 : vector<1x8x128xf32> to vector<8x128xf32>
    %320 = vector.shape_cast %316 : vector<8x128xf32> to vector<1x8x128xf32>
    tpu.vector_store %arg2[%c40, %317, %c0_75], %320 {strides = array<i32>} : memref<48x8x128xf32, #tpu.memory_space<vmem>>, vector<1x8x128xf32>,
    %321 = arith.mulf %310, %32 : vector<8x128xf32>
    %c41 = arith.constant 41 : index
    %322 = arith.index_cast %3 : i32 to index
    %c0_76 = arith.constant 0 : index
    %323 = vector.load %arg2[%c41, %322, %c0_76] : memref<48x8x128xf32, #tpu.memory_space<vmem>>, vector<1x8x128xf32>
    %324 = vector.shape_cast %323 : vector<1x8x128xf32> to vector<8x128xf32>
    %325 = vector.shape_cast %321 : vector<8x128xf32> to vector<1x8x128xf32>
    tpu.vector_store %arg2[%c41, %322, %c0_76], %325 {strides = array<i32>} : memref<48x8x128xf32, #tpu.memory_space<vmem>>, vector<1x8x128xf32>,
    %cst_77 = arith.constant 0.0393362381 : f32
    %326 = vector.broadcast %cst_77 : f32 to vector<8x128xf32>
    %327 = arith.mulf %326, %73 : vector<8x128xf32>
    %328 = arith.mulf %327, %84 : vector<8x128xf32>
    %329 = arith.mulf %328, %21 : vector<8x128xf32>
    %c42 = arith.constant 42 : index
    %330 = arith.index_cast %3 : i32 to index
    %c0_78 = arith.constant 0 : index
    %331 = vector.load %arg2[%c42, %330, %c0_78] : memref<48x8x128xf32, #tpu.memory_space<vmem>>, vector<1x8x128xf32>
    %332 = vector.shape_cast %331 : vector<1x8x128xf32> to vector<8x128xf32>
    %333 = vector.shape_cast %329 : vector<8x128xf32> to vector<1x8x128xf32>
    tpu.vector_store %arg2[%c42, %330, %c0_78], %333 {strides = array<i32>} : memref<48x8x128xf32, #tpu.memory_space<vmem>>, vector<1x8x128xf32>,
    %334 = arith.mulf %328, %28 : vector<8x128xf32>
    %c43 = arith.constant 43 : index
    %335 = arith.index_cast %3 : i32 to index
    %c0_79 = arith.constant 0 : index
    %336 = vector.load %arg2[%c43, %335, %c0_79] : memref<48x8x128xf32, #tpu.memory_space<vmem>>, vector<1x8x128xf32>
    %337 = vector.shape_cast %336 : vector<1x8x128xf32> to vector<8x128xf32>
    %338 = vector.shape_cast %334 : vector<8x128xf32> to vector<1x8x128xf32>
    tpu.vector_store %arg2[%c43, %335, %c0_79], %338 {strides = array<i32>} : memref<48x8x128xf32, #tpu.memory_space<vmem>>, vector<1x8x128xf32>,
    %339 = arith.mulf %328, %32 : vector<8x128xf32>
    %c44 = arith.constant 44 : index
    %340 = arith.index_cast %3 : i32 to index
    %c0_80 = arith.constant 0 : index
    %341 = vector.load %arg2[%c44, %340, %c0_80] : memref<48x8x128xf32, #tpu.memory_space<vmem>>, vector<1x8x128xf32>
    %342 = vector.shape_cast %341 : vector<1x8x128xf32> to vector<8x128xf32>
    %343 = vector.shape_cast %339 : vector<8x128xf32> to vector<1x8x128xf32>
    tpu.vector_store %arg2[%c44, %340, %c0_80], %343 {strides = array<i32>} : memref<48x8x128xf32, #tpu.memory_space<vmem>>, vector<1x8x128xf32>,
    %344 = arith.mulf %327, %87 : vector<8x128xf32>
    %345 = arith.mulf %344, %21 : vector<8x128xf32>
    %c45 = arith.constant 45 : index
    %346 = arith.index_cast %3 : i32 to index
    %c0_81 = arith.constant 0 : index
    %347 = vector.load %arg2[%c45, %346, %c0_81] : memref<48x8x128xf32, #tpu.memory_space<vmem>>, vector<1x8x128xf32>
    %348 = vector.shape_cast %347 : vector<1x8x128xf32> to vector<8x128xf32>
    %349 = vector.shape_cast %345 : vector<8x128xf32> to vector<1x8x128xf32>
    tpu.vector_store %arg2[%c45, %346, %c0_81], %349 {strides = array<i32>} : memref<48x8x128xf32, #tpu.memory_space<vmem>>, vector<1x8x128xf32>,
    %350 = arith.mulf %344, %28 : vector<8x128xf32>
    %c46 = arith.constant 46 : index
    %351 = arith.index_cast %3 : i32 to index
    %c0_82 = arith.constant 0 : index
    %352 = vector.load %arg2[%c46, %351, %c0_82] : memref<48x8x128xf32, #tpu.memory_space<vmem>>, vector<1x8x128xf32>
    %353 = vector.shape_cast %352 : vector<1x8x128xf32> to vector<8x128xf32>
    %354 = vector.shape_cast %350 : vector<8x128xf32> to vector<1x8x128xf32>
    tpu.vector_store %arg2[%c46, %351, %c0_82], %354 {strides = array<i32>} : memref<48x8x128xf32, #tpu.memory_space<vmem>>, vector<1x8x128xf32>,
    %355 = arith.mulf %344, %32 : vector<8x128xf32>
    %c47 = arith.constant 47 : index
    %356 = arith.index_cast %3 : i32 to index
    %c0_83 = arith.constant 0 : index
    %357 = vector.load %arg2[%c47, %356, %c0_83] : memref<48x8x128xf32, #tpu.memory_space<vmem>>, vector<1x8x128xf32>
    %358 = vector.shape_cast %357 : vector<1x8x128xf32> to vector<8x128xf32>
    %359 = vector.shape_cast %355 : vector<8x128xf32> to vector<1x8x128xf32>
    tpu.vector_store %arg2[%c47, %356, %c0_83], %359 {strides = array<i32>} : memref<48x8x128xf32, #tpu.memory_space<vmem>>, vector<1x8x128xf32>,
    %c1_i32_84 = arith.constant 1 : i32
    return
  }
  func.func @transform_0(%arg0: i32) -> (i32, i32, i32) {
    %c0_i32 = arith.constant 0 : i32
    %c0_i32_0 = arith.constant 0 : i32
    %c0_i32_1 = arith.constant 0 : i32
    return %c0_i32, %arg0, %c0_i32_0 : i32, i32, i32
  }
  func.func @transform_1(%arg0: i32) -> (i32, i32, i32) {
    %c0_i32 = arith.constant 0 : i32
    %c0_i32_0 = arith.constant 0 : i32
    %c0_i32_1 = arith.constant 0 : i32
    return %c0_i32, %arg0, %c0_i32_0 : i32, i32, i32
  }
}

</mosaic_0001>

<bundles_post_ra>
// kernel: spherical_bessel_with_harmonics.1
= control target key start
LH: loop header
LB: loop body
LE: loop exit
PB: predicated region body
PF: predicated region fallthrough
CT: control target
= control target key end

     0   :  { %v839_v20 = vmov 683565275   ;;  %v840_v22 = vmov 2475754826   ;;  %v841_v24 = vmov 2131351028   ;;  %s1221_s0 = inlined_call_operand.vmem [shape: f32[3,8,128], index: 0, kind: input, shape index: {}]   ;;  %s1222_s1 = inlined_call_operand.vmem [shape: f32[48,8,128], index: 1, kind: output, shape index: {}]  }
   0x1   :  { %v858_v0 = vld [vmem:[%s1221_s0] sm:$0xff]  ;;  %v866_v2 = vld [vmem:[%s1221_s0 + $0x10] sm:$0xff]  ;;  %v842_v26 = vmov 2102212464   ;;  %v843_v28 = vmov 920167782  }
   0x2   :  { %v861_v1 = vmul.f32 0.62831855, %v858_v0  ;;  %v268_v6 = vand.u32 2139095040, %v866_v2  ;;  %v265_v10 = vand.u32 2147483647, %v866_v2 }
   0x3   :  { %v844_v37 = vmov 1326507024  }
   0x4   :  { %v22_v3 = vand.u32 2139095040, %v861_v1  ;;  %v19_v4 = vand.u32 2147483647, %v861_v1  ;;  %v269_v8 = vshrl.u32 %v268_v6, 23  ;;  %v272_v16 = vand.u32 8388607, %v265_v10 }
   0x5   :  { %vm21_vm14 = vcmp.lt.s32.totalorder %v861_v1, 0 }
   0x6   :  { %v23_v5 = vshrl.u32 %v22_v3, 23  ;;  %v26_v9 = vand.u32 8388607, %v19_v4  ;;  %v758_v12 = vadd.s32 4294967169, %v269_v8  ;;  %v273_v31 = vor.u32 8388608, %v272_v16 }
   0x7   :  { %vm20_vm15 = vcmp.le.f32.partialorder %v19_v4, 0.7853982 }
   0x8   :  { %v747_v7 = vadd.s32 4294967169, %v23_v5  ;;  %v275_v13 = vadd.s32 1, %v758_v12  ;;  %v27_v14 = vor.u32 8388608, %v26_v9  ;;  %v313_v59 = vshll.u32 %v273_v31, 8 }
   0xa   :  { %v29_v11 = vadd.s32 1, %v747_v7  ;;  %vm276_vm1 = vcmp.gt.s32.totalorder %v275_v13, 0  ;;  %v876_v30 = vshll.u32 %v27_v14, 8 }
   0xb   :  { %v277_v39 = vsel %vm276_vm1, %v275_v13, 0  ;;  %vm267_vm1 = vcmp.lt.s32.totalorder %v866_v2, 0 }
   0xc   :  { %vm30_vm0 = vcmp.gt.s32.totalorder %v29_v11, 0  ;;  %v279_v52 = vand.u32 31, %v277_v39  ;;  %v278_v55 = vshrl.u32 %v277_v39, 5 }
   0xd   :  { %v31_v15 = vsel %vm30_vm0, %v29_v11, 0 }
   0xe   :  { %v33_v17 = vand.u32 31, %v31_v15  ;;  %v32_v18 = vshrl.u32 %v31_v15, 5  ;;  %v280_v3 = vsub.s32 32, %v279_v52  ;;  %v282_v5 = vshll.u32 %v839_v20, %v279_v52 }
   0xf   :  { %v285_v6 = vshll.u32 %v840_v22, %v279_v52  ;;  %v288_v7 = vshll.u32 %v841_v24, %v279_v52  ;;  %v291_v9 = vshll.u32 %v842_v26, %v279_v52  ;;  %v294_v11 = vshll.u32 %v843_v28, %v279_v52 }
  0x10   :  { %v34_v19 = vsub.s32 32, %v33_v17  ;;  %v36_v21 = vshll.u32 %v839_v20, %v33_v17  ;;  %v39_v23 = vshll.u32 %v840_v22, %v33_v17  ;;  %v42_v25 = vshll.u32 %v841_v24, %v33_v17 }
  0x11   :  { %v45_v27 = vshll.u32 %v842_v26, %v33_v17  ;;  %v48_v29 = vshll.u32 %v843_v28, %v33_v17  ;;  %vm51_vm2 = vcmp.lt.s32.totalorder %v32_v18, 1  ;;  %vm54_vm3 = vcmp.lt.s32.totalorder %v32_v18, 4 }
  0x12   :  { %v35_v32 = vshrl.u32 %v839_v20, %v34_v19  ;;  %v37_v33 = vshrl.u32 %v840_v22, %v34_v19  ;;  %v40_v34 = vshrl.u32 %v841_v24, %v34_v19  ;;  %v43_v35 = vshrl.u32 %v842_v26, %v34_v19 }
  0x13   :  { %v46_v36 = vshrl.u32 %v843_v28, %v34_v19  ;;  %v49_v38 = vshrl.u32 %v844_v37, %v34_v19  ;;  %vm52_vm4 = vcmp.lt.s32.totalorder %v32_v18, 2  ;;  %vm53_vm5 = vcmp.lt.s32.totalorder %v32_v18, 3 }
  0x14   :  { %v38_v40 = vor.u32 %v37_v33, %v36_v21  ;;  %v41_v41 = vor.u32 %v40_v34, %v39_v23  ;;  %v44_v42 = vor.u32 %v43_v35, %v42_v25  ;;  %vm297_vm6 = vcmp.lt.s32.totalorder %v278_v55, 1 }
  0x15   :  { %v47_v43 = vor.u32 %v46_v36, %v45_v27  ;;  %v50_v44 = vor.u32 %v49_v38, %v48_v29  ;;  %v281_v12 = vshrl.u32 %v839_v20, %v280_v3  ;;  %v283_v13 = vshrl.u32 %v840_v22, %v280_v3 }
  0x16   :  { %v55_v45 = vsel %vm51_vm2, %v35_v32, %v38_v40  ;;  %v56_v46 = vsel %vm54_vm3, %v44_v42, 2102212464  ;;  %v59_v47 = vsel %vm51_vm2, %v38_v40, %v41_v41  ;;  %v63_v48 = vsel %vm51_vm2, %v41_v41, %v44_v42 }
  0x17   :  { %v57_v49 = vsel %vm53_vm5, %v41_v41, %v56_v46  ;;  %v60_v50 = vsel %vm54_vm3, %v47_v43, 920167782  ;;  %v64_v51 = vsel %vm54_vm3, %v50_v44, 1326507024  ;;  %v286_v14 = vshrl.u32 %v841_v24, %v280_v3 }
  0x18   :  { %v61_v53 = vsel %vm53_vm5, %v44_v42, %v60_v50  ;;  %v65_v54 = vsel %vm53_vm5, %v47_v43, %v64_v51  ;;  %v58_v56 = vsel %vm52_vm4, %v55_v45, %v57_v49  ;;  %v289_v15 = vshrl.u32 %v842_v26, %v280_v3  ;;  %v910_v49 = vld [vmem:[%s1221_s0 + $0x8] sm:$0xff] }
  0x19   :  { %v62_v57 = vsel %vm52_vm4, %v59_v47, %v61_v53  ;;  %v66_v58 = vsel %vm52_vm4, %v63_v48, %v65_v54  ;;  %v74_v8 = vmul.u32 %v876_v30, %v58_v56  ;;  %v292_v17 = vshrl.u32 %v843_v28, %v280_v3 }
  0x1a   :  { %v880_v60 = vmul.u32.u64.low %v876_v30, %v66_v58  ;;  %v881_v61 = vmul.u32.u64.high %v876_v30, %v66_v58, %v880_v60  ;;  %v884_v62 = vmul.u32.u64.low %v876_v30, %v62_v57  ;;  %v885_v63 = vmul.u32.u64.high %v876_v30, %v62_v57, %v884_v62 }
  0x1b   :  { %vm298_vm8 = vcmp.lt.s32.totalorder %v278_v55, 2  ;;  %v284_v18 = vor.u32 %v283_v13, %v282_v5  ;;  %v287_v19 = vor.u32 %v286_v14, %v285_v6  ;;  %v290_v21 = vor.u32 %v289_v15, %v288_v7 }
  0x1c   :  { %vm76_vm7 = vc.u32 %v881_v61, %v884_v62  ;;  %v77_v16 = vadd.s32 1, %v885_v63  ;;  %v295_v23 = vshrl.u32 %v844_v37, %v280_v3  ;;  %v293_v27 = vor.u32 %v292_v17, %v291_v9 }
  0x1d   :  { %vm299_vm9 = vcmp.lt.s32.totalorder %v278_v55, 3  ;;  %vm300_vm10 = vcmp.lt.s32.totalorder %v278_v55, 4  ;;  %v301_v24 = vsel %vm297_vm6, %v281_v12, %v284_v18  ;;  %v305_v30 = vsel %vm297_vm6, %v284_v18, %v287_v19 }
  0x1e   :  { %v78_v25 = vsel %vm76_vm7, %v77_v16, %v885_v63  ;;  %v296_v22 = vor.u32 %v295_v23, %v294_v11  ;;  %v302_v26 = vsel %vm300_vm10, %v290_v21, 2102212464  ;;  %v306_v31 = vsel %vm300_vm10, %v293_v27, 920167782 }
  0x1f   :  { %v79_v20 = vadd.s32 %v78_v25, %v74_v8  ;;  %v303_v29 = vsel %vm299_vm9, %v287_v19, %v302_v26  ;;  %v309_v28 = vsel %vm297_vm6, %v287_v19, %v290_v21  ;;  %v307_v33 = vsel %vm299_vm9, %v290_v21, %v306_v31 }
  0x20   :  { %v310_v34 = vsel %vm300_vm10, %v296_v22, 1326507024  ;;  %v304_v35 = vsel %vm298_vm8, %v301_v24, %v303_v29  ;;  %v308_v36 = vsel %vm298_vm8, %v305_v30, %v307_v33  ;;  %v237_v53 = vmul.f32 %v910_v49, %v910_v49 }
  0x21   :  { %v80_v32 = vadd.s32 536870912, %v79_v20  ;;  %v311_v37 = vsel %vm299_vm9, %v293_v27, %v310_v34  ;;  %v899_v40 = vmul.u32.u64.low %v313_v59, %v308_v36  ;;  %v900_v41 = vmul.u32.u64.high %v313_v59, %v308_v36, %v899_v40 }
  0x22   :  { %v312_v39 = vsel %vm298_vm8, %v309_v28, %v311_v37  ;;  %v320_v45 = vmul.u32 %v313_v59, %v304_v35  ;;  %v238_v58 = vsub.f32 1.0, %v237_v53  ;;  %v75_v60 = vadd.s32 %v884_v62, %v881_v61 }
  0x23   :  { %v81_v38 = vshrl.u32 %v80_v32, 30  ;;  %v902_v42 = vmul.u32.u64.low %v313_v59, %v312_v39  ;;  %v903_v43 = vmul.u32.u64.high %v313_v59, %v312_v39, %v902_v42  ;;  %v323_v47 = vadd.s32 1, %v900_v41 }
  0x24   :  { %v920_v8 = vmax.f32 %v238_v58, 1e-10  ;;  %v15_v23 = vadd.f32 1e-08, %v858_v0  ;;  %v254_v32 = vmul.f32 5.0, %v237_v53  ;;  %v248_v37 = vmul.f32 3.0, %v237_v53 }
  0x25   :  { %v82_v44 = vshll.u32 %v81_v38, 30  ;;  %vm322_vm11 = vc.u32 %v903_v43, %v899_v40  ;;  %v105_v19 = vsub.s32 4, %v81_v38  ;;  %v321_v21 = vadd.s32 %v899_v40, %v903_v43 }
  0x26   :  { %v324_v50 = vsel %vm322_vm11, %v323_v47, %v900_v41  ;;  %827 = vrsqrt.f32 %v920_v8  ;;  %v756_v41 = vadd.f32 -3.0, %v254_v32  ;;  %vm242_vm0 = vcmp.eq.f32.partialorder %v920_v8, inf }
  0x27   :  { %v83_v46 = vsub.s32 %v79_v20, %v82_v44  ;;  %v325_v51 = vadd.s32 %v324_v50, %v320_v45  ;;  %v106_v29 = vsel %vm21_vm14, %v105_v19, %v81_v38  ;;  %829 = vrcp.f32 %v15_v23 }
  0x28   :  { %v108_v34 = vsel %vm20_vm15, 0, %v106_v29  ;;  %v933_v44 = vmul.f32 0.48860252, %v910_v49  ;;  %v755_v45 = vadd.f32 -1.0, %v248_v37  ;;  %vm244_vm2 = vcmp.eq.f32.partialorder %v920_v8, 0.0 }
  0x29   :  { %v85_v48 = vsub.s32 0, %v83_v46  ;;  %v326_v54 = vadd.s32 536870912, %v325_v51  ;;  %v112_v4 = vadd.s32 3, %v108_v34  ;;  %v245_v47 = vand.u32 2147483648, %v920_v8 }
  0x2a   :  { %v256_v50 = vmul.f32 0.5, %v756_v41  ;;  %vm111_vm3 = vweird.f32 %v861_v1  ;;  %vm946_vm4 = vcmp.le.f32.partialorder %v265_v10, 0.7853982  ;;  %v251_v58 = vmul.f32 -3.0, %v910_v49 }
  0x2b   :  { %v748_v52 = vmin.u32 %v85_v48, %v83_v46  ;;  %v915_v56 = vshrl.u32 %v326_v54, 30  ;;  %vm357_vm11 = vweird.f32 %v866_v2 }
  0x2d   :  { %v87_v55 = vclz %v748_v52  ;;  %v328_v59 = vshll.u32 %v915_v56, 30  ;;  %v351_v42 = vsub.s32 4, %v915_v56  ;;  %v216_v52 = vand.u32 3, %v108_v34 }
  0x2f   :  { %v749_v57 = vadd.s32 4294967294, %v87_v55  ;;  %v329_v3 = vsub.s32 %v325_v51, %v328_v59  ;;  %v113_v51 = vand.u32 3, %v112_v4  ;;  %v352_v54 = vsel %vm267_vm1, %v351_v42, %v915_v56 }
  0x30   :  { %v828_v33 = vpop.eup %827  ;;  %vm217_vm6 = vcmp.lt.s32.totalorder %v216_v52, 2  ;;  %vm221_vm7 = vcmp.eq.s32.totalorder %v216_v52, 2  ;;  %vm218_vm9 = vcmp.eq.s32.totalorder %v216_v52, 0 }
  0x31   :  { %vm750_vm12 = vcmp.lt.s32.totalorder %v749_v57, 0  ;;  %v331_v9 = vsub.s32 0, %v329_v3  ;;  %v241_v38 = vmul.f32 %v828_v33, %v920_v8  ;;  %v830_v59 = vpop.eup %829  ;;  %vm118_vm5 = vcmp.eq.s32.totalorder %v113_v51, 2 }
  0x32   :  { %v90_v63 = vsel %vm750_vm12, 0, %v749_v57  ;;  %vm115_vm8 = vcmp.eq.s32.totalorder %v113_v51, 0  ;;  %vm114_vm10 = vcmp.lt.s32.totalorder %v113_v51, 2 }
  0x33   :  { %v91_v5 = vsub.s32 32, %v90_v63  ;;  %v92_v6 = vshll.u32 %v83_v46, %v90_v63  ;;  %v95_v7 = vsub.s32 4294967266, %v90_v63  ;;  %v759_v13 = vmin.u32 %v331_v9, %v329_v3 }
  0x34   :  { %v261_v46 = vmul.f32 15.0, %v910_v49  ;;  %v243_v53 = vsel %vm242_vm0, %v920_v8, %v241_v38  ;;  %v952_v63 = vmul.f32 3.0, %v920_v8 }
  0x35   :  { %v93_v11 = vshrl.u32 %v75_v60, %v91_v5  ;;  %v96_v12 = vadd.s32 127, %v95_v7  ;;  %v333_v16 = vclz %v759_v13  ;;  %v250_v60 = vmul.f32 0.5, %v755_v45 }
  0x36   :  { %v955_v5 = vmul.f32 %v261_v46, %v920_v8  ;;  %v959_v56 = vsel %vm244_vm2, %v245_v47, %v243_v53  ;;  %v257_v7 = vmul.f32 %v910_v49, %v256_v50 }
  0x37   :  { %v94_v14 = vor.u32 %v93_v11, %v92_v6  ;;  %v97_v15 = vshll.u32 %v96_v12, 23  ;;  %v760_v61 = vadd.s32 4294967294, %v333_v16  ;;  %v354_v6 = vsel %vm946_vm4, 0, %v352_v54 }
  0x38   :  { %v17_v16 = vmul.f32 0.6324555, %v830_v59  ;;  %v252_v19 = vmul.f32 %v251_v58, %v959_v56  ;;  %v571_v59 = vmul.f32 0.1820914, %v952_v63 }
  0x39   :  { %v98_v17 = vor.u32 4788187, %v97_v15  ;;  %v101_v18 = vcvt.s32.f32 %v94_v14  ;;  %vm761_vm13 = vcmp.lt.s32.totalorder %v760_v61, 0  ;;  %v461_v15 = vadd.s32 3, %v354_v6 }
  0x3a   :  { %v336_v27 = vsel %vm761_vm13, 0, %v760_v61 }
  0x3b   :  { %v99_v62 = vand.u32 2147483647, %v98_v17  ;;  %v337_v20 = vsub.s32 32, %v336_v27  ;;  %v338_v22 = vshll.u32 %v329_v3, %v336_v27  ;;  %v341_v24 = vsub.s32 4294967266, %v336_v27 }
  0x3c   :  { %v757_v3 = vadd.f32 -1.0, %v254_v32  ;;  %v972_v27 = vmul.f32 0.63078314, %v250_v60  ;;  %v462_v29 = vand.u32 3, %v461_v15 }
  0x3d   :  { %v102_v25 = vmul.f32 %v101_v18, %v99_v62  ;;  %v339_v30 = vshrl.u32 %v321_v21, %v337_v20  ;;  %v342_v31 = vadd.s32 127, %v341_v24  ;;  %v247_v18 = vsub.f32 0.0, %v959_v56 }
  0x3e   :  { %v259_v21 = vmul.f32 -1.5, %v757_v3  ;;  %v974_v20 = vmul.f32 0.7463527, %v257_v7  ;;  %vm463_vm0 = vcmp.lt.s32.totalorder %v462_v29, 2 }
  0x3f   :  { %v103_v26 = vxor.u32 2147483648, %v102_v25  ;;  %v340_v35 = vor.u32 %v339_v30, %v338_v22  ;;  %v343_v36 = vshll.u32 %v342_v31, 23  ;;  %v504_v33 = vmul.f32 0.48860252, %v247_v18 }
  0x40   :  { %v260_v34 = vmul.f32 %v259_v21, %v959_v56 }
  0x41   :  { %v104_v28 = vsel %vm21_vm14, %v103_v26, %v102_v25  ;;  %v344_v39 = vor.u32 4788187, %v343_v36  ;;  %v347_v40 = vcvt.s32.f32 %v340_v35  ;;  %v358_v26 = vand.u32 3, %v354_v6 }
  0x42   :  { %v107_v0 = vsel %vm20_vm15, %v861_v1, %v104_v28  ;;  %v263_v35 = vmul.f32 -15.0, %v920_v8  ;;  %vm467_vm14 = vcmp.eq.s32.totalorder %v462_v29, 2 }
  0x43   :  { %831 = vcosq.f32 %v107_v0  ;;  %v345_v43 = vand.u32 2147483647, %v344_v39  ;;  %vm359_vm12 = vcmp.lt.s32.totalorder %v358_v26, 2  ;;  %vm363_vm13 = vcmp.eq.s32.totalorder %v358_v26, 2 }
  0x44   :  { %833 = vsinq.f32 %v107_v0  ;;  %v544_v0 = vmul.f32 0.3641828, %v252_v19  ;;  %vm360_vm15 = vcmp.eq.s32.totalorder %v358_v26, 0  ;;  %v264_v6 = vmul.f32 %v263_v35, %v959_v56 }
  0x45   :  { %v348_v48 = vmul.f32 %v347_v40, %v345_v43 }
  0x47   :  { %v349_v57 = vxor.u32 2147483648, %v348_v48 }
  0x49   :  { %v350_v10 = vsel %vm267_vm1, %v349_v57, %v348_v48  ;;  %vm464_vm1 = vcmp.eq.s32.totalorder %v462_v29, 0 }
  0x4a   :  { %v353_v11 = vsel %vm946_vm4, %v866_v2, %v350_v10  ;;  %v611_v10 = vmul.f32 0.3046972, %v260_v34 }
  0x4b   :  { %835 = vcosq.f32 %v353_v11 }
  0x4c   :  { %837 = vsinq.f32 %v353_v11 }
  0x4d   :  { %v832_v9 = vpop.eup %831 }
  0x4e   :  { %v834_v12 = vpop.eup %833  ;;  %v119_v13 = vxor.u32 2147483648, %v832_v9 }
  0x4f   :  { %v116_v14 = vxor.u32 2147483648, %v834_v12 }
  0x50   :  { %v120_v17 = vsel %vm118_vm5, %v119_v13, %v834_v12  ;;  %v223_v49 = vsel %vm221_vm7, %v119_v13, %v834_v12 }
  0x51   :  { %v117_v61 = vsel %vm115_vm8, %v832_v9, %v116_v14  ;;  %v220_v62 = vsel %vm218_vm9, %v832_v9, %v116_v14 }
  0x52   :  { %v121_v23 = vsel %vm114_vm10, %v117_v61, %v120_v17  ;;  %v224_v25 = vsel %vm217_vm6, %v220_v62, %v223_v49 }
  0x53   :  { %v122_v22 = vsel %vm111_vm3, nan, %v121_v23  ;;  %v225_v24 = vsel %vm111_vm3, nan, %v224_v25 }
  0x54   :  { %v981_v30 = vmul.f32 %v122_v22, %v17_v16  ;;  %v227_v31 = vmul.f32 %v225_v24, %v122_v22  ;;  %v229_v28 = vmul.f32 %v225_v24, %v225_v24  ;;  %v230_v32 = vmul.f32 %v122_v22, %v122_v22 }
  0x55   :  { %v836_v4 = vpop.eup %835 }
  0x56   :  { %v483_v36 = vmul.f32 0.2820948, %v981_v30  ;;  %v228_v37 = vadd.f32 %v227_v31, %v227_v31  ;;  %v231_v1 = vsub.f32 %v229_v28, %v230_v32  ;;  %v492_v39 = vmul.f32 %v933_v44, %v981_v30  ;;  %v838_v43 = vpop.eup %837 }
  0x57   :  { %v532_v40 = vmul.f32 %v972_v27, %v981_v30  ;;  %v599_v41 = vmul.f32 %v974_v20, %v981_v30  ;;  %v364_v45 = vxor.u32 2147483648, %v836_v4  ;;  %v361_v50 = vxor.u32 2147483648, %v838_v43 }
  0x58   :  { %484 = vst [vmem:[%s1222_s1] sm:$0xff] %v483_v36  ;;  %v995_v8 = vmul.f32 %v228_v37, %v17_v16  ;;  %v233_v38 = vmul.f32 %v228_v37, %v225_v24  ;;  %v234_v42 = vmul.f32 %v231_v1, %v122_v22  ;;  %768 = vst [vmem:[%s1222_s1 + $0x18] sm:$0xff] %v492_v39  ;;  %v638_v32 = vmul.f32 0.09635372, %v955_v5 }
  0x59   :  { %777 = vst [vmem:[%s1222_s1 + $0x60] sm:$0xff] %v532_v40  ;;  %792 = vst [vmem:[%s1222_s1 + $0xd8] sm:$0xff] %v599_v41  ;;  %v365_v51 = vsel %vm363_vm13, %v364_v45, %v838_v43  ;;  %v469_v52 = vsel %vm467_vm14, %v364_v45, %v838_v43  ;;  %v362_v57 = vsel %vm360_vm15, %v836_v4, %v361_v50 }
  0x5a   :  { %v485_v46 = vmul.f32 0.2820948, %v995_v8  ;;  %v235_v47 = vadd.f32 %v234_v42, %v233_v38  ;;  %v496_v48 = vmul.f32 %v933_v44, %v995_v8  ;;  %v536_v53 = vmul.f32 %v972_v27, %v995_v8 }
  0x5b   :  { %v603_v54 = vmul.f32 %v974_v20, %v995_v8  ;;  %v466_v58 = vsel %vm464_vm1, %v836_v4, %v361_v50  ;;  %v366_v60 = vsel %vm359_vm12, %v362_v57, %v365_v51 }
  0x5c   :  { %766 = vst [vmem:[%s1222_s1 + $0x8] sm:$0xff] %v485_v46  ;;  %v1017_v55 = vmul.f32 %v235_v47, %v17_v16  ;;  %769 = vst [vmem:[%s1222_s1 + $0x20] sm:$0xff] %v496_v48  ;;  %v470_v3 = vsel %vm463_vm0, %v466_v58, %v469_v52  ;;  %v1038_v9 = vsel %vm357_vm11, nan, %v366_v60 }
  0x5d   :  { %778 = vst [vmem:[%s1222_s1 + $0x68] sm:$0xff] %v536_v53  ;;  %793 = vst [vmem:[%s1222_s1 + $0xe0] sm:$0xff] %v603_v54  ;;  %v1042_v11 = vsel %vm357_vm11, nan, %v470_v3  ;;  %v505_v12 = vmul.f32 %v504_v33, %v1038_v9  ;;  %v545_v14 = vmul.f32 %v544_v0, %v1038_v9  ;;  %v612_v28 = vmul.f32 %v611_v10, %v1038_v9 }
  0x5e   :  { %v488_v7 = vmul.f32 0.2820948, %v1017_v55  ;;  %v500_v63 = vmul.f32 %v933_v44, %v1017_v55  ;;  %v518_v13 = vmul.f32 %v504_v33, %v1042_v11  ;;  %v540_v56 = vmul.f32 %v972_v27, %v1017_v55 }
  0x5f   :  { %v558_v2 = vmul.f32 %v544_v0, %v1042_v11  ;;  %v472_v44 = vmul.f32 %v1038_v9, %v1038_v9  ;;  %v473_v15 = vmul.f32 %v1042_v11, %v1042_v11  ;;  %v475_v16 = vmul.f32 %v1042_v11, %v1038_v9 }
  0x60   :  { %767 = vst [vmem:[%s1222_s1 + $0x10] sm:$0xff] %v488_v7  ;;  %770 = vst [vmem:[%s1222_s1 + $0x28] sm:$0xff] %v500_v63  ;;  %v506_v17 = vmul.f32 %v505_v12, %v981_v30  ;;  %v510_v49 = vmul.f32 %v505_v12, %v995_v8  ;;  %v514_v18 = vmul.f32 %v505_v12, %v1017_v55  ;;  %v665_v33 = vmul.f32 0.039336238, %v264_v6 }
  0x61   :  { %v519_v61 = vmul.f32 %v518_v13, %v981_v30  ;;  %779 = vst [vmem:[%s1222_s1 + $0x70] sm:$0xff] %v540_v56  ;;  %v523_v62 = vmul.f32 %v518_v13, %v995_v8  ;;  %v527_v19 = vmul.f32 %v518_v13, %v1017_v55  ;;  %v546_v21 = vmul.f32 %v545_v14, %v981_v30 }
  0x62   :  { %v550_v23 = vmul.f32 %v545_v14, %v995_v8  ;;  %771 = vst [vmem:[%s1222_s1 + $0x30] sm:$0xff] %v506_v17  ;;  %772 = vst [vmem:[%s1222_s1 + $0x38] sm:$0xff] %v510_v49  ;;  %v554_v25 = vmul.f32 %v545_v14, %v1017_v55  ;;  %v559_v27 = vmul.f32 %v558_v2, %v981_v30 }
  0x63   :  { %773 = vst [vmem:[%s1222_s1 + $0x40] sm:$0xff] %v514_v18  ;;  %774 = vst [vmem:[%s1222_s1 + $0x48] sm:$0xff] %v519_v61  ;;  %v563_v22 = vmul.f32 %v558_v2, %v995_v8  ;;  %v567_v24 = vmul.f32 %v558_v2, %v1017_v55  ;;  %v474_v26 = vsub.f32 %v472_v44, %v473_v15 }
  0x64   :  { %775 = vst [vmem:[%s1222_s1 + $0x50] sm:$0xff] %v523_v62  ;;  %776 = vst [vmem:[%s1222_s1 + $0x58] sm:$0xff] %v527_v19  ;;  %v476_v29 = vadd.f32 %v475_v16, %v475_v16  ;;  %v607_v31 = vmul.f32 %v974_v20, %v1017_v55  ;;  %v625_v20 = vmul.f32 %v611_v10, %v1042_v11 }
  0x65   :  { %780 = vst [vmem:[%s1222_s1 + $0x78] sm:$0xff] %v546_v21  ;;  %781 = vst [vmem:[%s1222_s1 + $0x80] sm:$0xff] %v550_v23  ;;  %v572_v0 = vmul.f32 %v571_v59, %v474_v26  ;;  %v613_v35 = vmul.f32 %v612_v28, %v981_v30  ;;  %v617_v36 = vmul.f32 %v612_v28, %v995_v8 }
  0x66   :  { %782 = vst [vmem:[%s1222_s1 + $0x88] sm:$0xff] %v554_v25  ;;  %783 = vst [vmem:[%s1222_s1 + $0x90] sm:$0xff] %v559_v27  ;;  %v585_v34 = vmul.f32 %v571_v59, %v476_v29  ;;  %v621_v37 = vmul.f32 %v612_v28, %v1017_v55  ;;  %v626_v1 = vmul.f32 %v625_v20, %v981_v30 }
  0x67   :  { %784 = vst [vmem:[%s1222_s1 + $0x98] sm:$0xff] %v563_v22  ;;  %785 = vst [vmem:[%s1222_s1 + $0xa0] sm:$0xff] %v567_v24  ;;  %v630_v39 = vmul.f32 %v625_v20, %v995_v8  ;;  %v634_v40 = vmul.f32 %v625_v20, %v1017_v55  ;;  %v573_v5 = vmul.f32 %v572_v0, %v981_v30 }
  0x68   :  { %794 = vst [vmem:[%s1222_s1 + $0xe8] sm:$0xff] %v607_v31  ;;  %v577_v41 = vmul.f32 %v572_v0, %v995_v8  ;;  %v581_v4 = vmul.f32 %v572_v0, %v1017_v55  ;;  %v586_v38 = vmul.f32 %v585_v34, %v981_v30  ;;  %795 = vst [vmem:[%s1222_s1 + $0xf0] sm:$0xff] %v613_v35 }
  0x69   :  { %796 = vst [vmem:[%s1222_s1 + $0xf8] sm:$0xff] %v617_v36  ;;  %v590_v42 = vmul.f32 %v585_v34, %v995_v8  ;;  %v594_v43 = vmul.f32 %v585_v34, %v1017_v55  ;;  %797 = vst [vmem:[%s1222_s1 + $0x100] sm:$0xff] %v621_v37  ;;  %v639_v45 = vmul.f32 %v638_v32, %v474_v26 }
  0x6a   :  { %798 = vst [vmem:[%s1222_s1 + $0x108] sm:$0xff] %v626_v1  ;;  %799 = vst [vmem:[%s1222_s1 + $0x110] sm:$0xff] %v630_v39  ;;  %v652_v46 = vmul.f32 %v638_v32, %v476_v29  ;;  %v477_v47 = vmul.f32 %v474_v26, %v1038_v9  ;;  %v478_v48 = vmul.f32 %v476_v29, %v1042_v11 }
  0x6b   :  { %800 = vst [vmem:[%s1222_s1 + $0x118] sm:$0xff] %v634_v40  ;;  %786 = vst [vmem:[%s1222_s1 + $0xa8] sm:$0xff] %v573_v5  ;;  %v480_v50 = vmul.f32 %v476_v29, %v1038_v9  ;;  %v481_v51 = vmul.f32 %v474_v26, %v1042_v11  ;;  %v640_v52 = vmul.f32 %v639_v45, %v981_v30 }
  0x6c   :  { %787 = vst [vmem:[%s1222_s1 + $0xb0] sm:$0xff] %v577_v41  ;;  %788 = vst [vmem:[%s1222_s1 + $0xb8] sm:$0xff] %v581_v4  ;;  %v644_v53 = vmul.f32 %v639_v45, %v995_v8  ;;  %v648_v54 = vmul.f32 %v639_v45, %v1017_v55  ;;  %v653_v57 = vmul.f32 %v652_v46, %v981_v30 }
  0x6d   :  { %789 = vst [vmem:[%s1222_s1 + $0xc0] sm:$0xff] %v586_v38  ;;  %790 = vst [vmem:[%s1222_s1 + $0xc8] sm:$0xff] %v590_v42  ;;  %v657_v58 = vmul.f32 %v652_v46, %v995_v8  ;;  %v661_v59 = vmul.f32 %v652_v46, %v1017_v55  ;;  %v479_v60 = vsub.f32 %v477_v47, %v478_v48 }
  0x6e   :  { %791 = vst [vmem:[%s1222_s1 + $0xd0] sm:$0xff] %v594_v43  ;;  %v482_v3 = vadd.f32 %v481_v51, %v480_v50  ;;  %801 = vst [vmem:[%s1222_s1 + $0x120] sm:$0xff] %v640_v52 }
  0x6f   :  { %802 = vst [vmem:[%s1222_s1 + $0x128] sm:$0xff] %v644_v53  ;;  %803 = vst [vmem:[%s1222_s1 + $0x130] sm:$0xff] %v648_v54  ;;  %v666_v10 = vmul.f32 %v665_v33, %v479_v60 }
  0x70   :  { %804 = vst [vmem:[%s1222_s1 + $0x138] sm:$0xff] %v653_v57  ;;  %805 = vst [vmem:[%s1222_s1 + $0x140] sm:$0xff] %v657_v58  ;;  %v679_v6 = vmul.f32 %v665_v33, %v482_v3 }
  0x71   :  { %806 = vst [vmem:[%s1222_s1 + $0x148] sm:$0xff] %v661_v59  ;;  %v667_v7 = vmul.f32 %v666_v10, %v981_v30  ;;  %v671_v63 = vmul.f32 %v666_v10, %v995_v8  ;;  %v675_v9 = vmul.f32 %v666_v10, %v1017_v55 }
  0x72   :  { %v680_v11 = vmul.f32 %v679_v6, %v981_v30  ;;  %v684_v12 = vmul.f32 %v679_v6, %v995_v8  ;;  %v688_v13 = vmul.f32 %v679_v6, %v1017_v55 }
  0x73   :  { %807 = vst [vmem:[%s1222_s1 + $0x150] sm:$0xff] %v667_v7  ;;  %808 = vst [vmem:[%s1222_s1 + $0x158] sm:$0xff] %v671_v63 }
  0x74   :  { %809 = vst [vmem:[%s1222_s1 + $0x160] sm:$0xff] %v675_v9  ;;  %810 = vst [vmem:[%s1222_s1 + $0x168] sm:$0xff] %v680_v11 }
  0x75   :  { %811 = vst [vmem:[%s1222_s1 + $0x170] sm:$0xff] %v684_v12  ;;  %812 = vst [vmem:[%s1222_s1 + $0x178] sm:$0xff] %v688_v13 }

</bundles_post_ra>
